<compile_context>
chip_gen: v7x
topology: tpu7x:2x2x1
jax: 0.10.0
libtpu: 0.0.40
codegen_flags: <defaults>
</compile_context>

<pallas_src>
import jax
import jax.numpy as jnp
from jax import lax
from jax.experimental import pallas as pl
from jax.experimental.pallas import tpu as pltpu

VOCAB_SIZE = 15
EMBED_SIZE = 10
HIDDEN_SIZE = 50
GATE_PAD = 128          # each gate padded to one full 128-lane vreg segment


# --------------------------------------------------------------------------
# Kernel: one invocation runs the whole sequence; h carried in vregs through
# an in-kernel fori_loop.  All operands are VMEM-resident for the whole call.
# --------------------------------------------------------------------------
def _gru_seq_kernel(tok_ref,        # SMEM scalar-prefetch: (seq_len,) int32 token ids
                    emb_proj_ref,   # (V, 3G)   precomputed x-projection + biases (gate-aligned)
                    h0_ref,         # (1, G)    initial hidden (lane-padded)
                    whh_ref,        # (G, 3G)   hidden -> [r|z|n] weights (gate-aligned)
                    bhn_ref,        # (1, G)    b_hh for the n gate
                    out_seq_ref,    # (seq_len, G) per-step outputs (single resident block)
                    h_ref):         # (1, G)    final hidden
    G = GATE_PAD
    seq_len = out_seq_ref.shape[0]
    b_hn = bhn_ref[...]                                  # hoisted out of the time loop

    def step(t, h):
        # token id from SMEM; clamp so an out-of-range id cannot read stray VMEM
        # (PyTorch nn.Embedding would raise instead — documented safety guard).
        tok = jnp.minimum(jnp.maximum(tok_ref[t], 0), VOCAB_SIZE - 1)
        gx = emb_proj_ref[pl.ds(tok, 1), :]              # (1, 3G)  precomputed W_ih x + biases
        gh = jnp.dot(h, whh_ref[...],
                     preferred_element_type=jnp.float32)  # (1, 3G)  single K=128 matmul

        # Gate slices are 128-lane aligned -> free vreg picks.
        r = jax.nn.sigmoid(gx[:, 0:G] + gh[:, 0:G])
        z = jax.nn.sigmoid(gx[:, G:2 * G] + gh[:, G:2 * G])
        n = jnp.tanh(gx[:, 2 * G:3 * G] + r * (gh[:, 2 * G:3 * G] + b_hn))
        h_new = (1.0 - z) * n + z * h

        out_seq_ref[pl.ds(t, 1), :] = h_new              # row store into resident block
        return h_new

    unroll = 4 if seq_len >= 4 else seq_len
    h_final = lax.fori_loop(0, seq_len, step, h0_ref[...], unroll=unroll)
    h_ref[...] = h_final


# --------------------------------------------------------------------------
# One-time parameter preparation (precompute input projection, gate-align,
# pad, fuse biases).  Done once, not per call.
# --------------------------------------------------------------------------
def prepare_params(params):
    H, E, V, G = HIDDEN_SIZE, EMBED_SIZE, VOCAB_SIZE, GATE_PAD
    emb = params["embedding"].astype(jnp.float32)      # (V, E)
    w_ih = params["w_ih"].astype(jnp.float32)          # (3H, E)
    w_hh = params["w_hh"].astype(jnp.float32)          # (3H, H)
    b_ih = params["b_ih"].astype(jnp.float32)          # (3H,)
    b_hh = params["b_hh"].astype(jnp.float32)          # (3H,)

    # Precomputed input projection per vocab row, gate-aligned. Each gate gets
    # its own 128-lane segment; b_hh for r/z is pre-summed (it is outside the
    # r* multiply), b_hn stays separate.
    gi = jnp.dot(emb, w_ih.T, precision=lax.Precision.HIGHEST) + b_ih   # (V, 3H)
    emb_proj = jnp.zeros((V, 3 * G), jnp.float32)
    emb_proj = emb_proj.at[:, 0:H].set(gi[:, 0:H] + b_hh[0:H])                 # r
    emb_proj = emb_proj.at[:, G:G + H].set(gi[:, H:2 * H] + b_hh[H:2 * H])     # z
    emb_proj = emb_proj.at[:, 2 * G:2 * G + H].set(gi[:, 2 * H:3 * H])         # n (input part)

    # Hidden -> all three gates in one (G, 3G) matmul (gate-aligned columns,
    # pad rows/columns zero so pad lanes stay inert).
    whh_t = w_hh.T                                     # (H, 3H)
    w_hh_all = jnp.zeros((G, 3 * G), jnp.float32)
    w_hh_all = w_hh_all.at[0:H, 0:H].set(whh_t[:, 0:H])                        # r <- h
    w_hh_all = w_hh_all.at[0:H, G:G + H].set(whh_t[:, H:2 * H])                # z <- h
    w_hh_all = w_hh_all.at[0:H, 2 * G:2 * G + H].set(whh_t[:, 2 * H:3 * H])    # n <- h

    b_hn = jnp.zeros((1, G), jnp.float32).at[0, 0:H].set(b_hh[2 * H:3 * H])

    return {"emb_proj": emb_proj, "w_hh_all": w_hh_all, "b_hn": b_hn}


# --------------------------------------------------------------------------
# Wrappers
# --------------------------------------------------------------------------
def encoder_rnn_sequence(tokens, hidden, prepped):
    """Run the GRU over a whole token sequence inside one pallas_call.

    tokens: (seq_len,) int32; hidden: (1,1,H) float32.
    Returns (outputs (seq_len,1,H), hidden (1,1,H)).
    """
    G, H, V = GATE_PAD, HIDDEN_SIZE, VOCAB_SIZE
    tokens = jnp.asarray(tokens, jnp.int32).reshape(-1)
    seq_len = tokens.shape[0]
    h0 = jnp.zeros((1, G), jnp.float32).at[:, :H].set(
        jnp.asarray(hidden, jnp.float32).reshape(1, H))

    out_seq, h_final = pl.pallas_call(
        _gru_seq_kernel,
        out_shape=(jax.ShapeDtypeStruct((seq_len, G), jnp.float32),
                   jax.ShapeDtypeStruct((1, G), jnp.float32)),
        grid_spec=pltpu.PrefetchScalarGridSpec(
            num_scalar_prefetch=1,
            grid=(1,),
            in_specs=[
                pl.BlockSpec((V, 3 * G), lambda i, tok: (0, 0)),      # emb_proj (resident)
                pl.BlockSpec((1, G), lambda i, tok: (0, 0)),          # h0
                pl.BlockSpec((G, 3 * G), lambda i, tok: (0, 0)),      # W_hh_all (resident)
                pl.BlockSpec((1, G), lambda i, tok: (0, 0)),          # b_hn
            ],
            out_specs=[
                pl.BlockSpec((seq_len, G), lambda i, tok: (0, 0)),    # per-step outputs
                pl.BlockSpec((1, G), lambda i, tok: (0, 0)),          # final hidden
            ],
        ),
        compiler_params=pltpu.CompilerParams(
            dimension_semantics=("arbitrary",)),
    )(tokens, prepped["emb_proj"], h0, prepped["w_hh_all"], prepped["b_hn"])

    outputs = out_seq[:, :H].reshape(seq_len, 1, H)
    hidden_out = h_final[:, :H].reshape(1, 1, H)
    return outputs, hidden_out
    # TODO(synk): for multi-sequence workloads, batch B sequences in lockstep
    # ((B,G)x(G,3G) per step) and add a "parallel" batch grid axis for v7x's
    # second TensorCore; single-sequence API keeps M=1 here.


def encoder_rnn_forward(token, hidden, prepped):
    """Single-step forward matching EncoderRNN.forward: returns (output, hidden),
    both (1,1,H), with output == new hidden."""
    tok = jnp.asarray(token, jnp.int32).reshape((1,))
    outs, hid = encoder_rnn_sequence(tok, hidden, prepped)
    return outs.reshape(1, 1, HIDDEN_SIZE), hid


# --------------------------------------------------------------------------
# Pure-JAX reference (mirrors torch.nn.Embedding + nn.GRU)
# --------------------------------------------------------------------------
def _reference_step(token, h, params):
    H = HIDDEN_SIZE
    x = params["embedding"][jnp.asarray(token, jnp.int32)].reshape(1, -1)  # (1, E)
    gi = jnp.dot(x, params["w_ih"].T, precision=lax.Precision.HIGHEST) + params["b_ih"]
    gh = jnp.dot(h, params["w_hh"].T, precision=lax.Precision.HIGHEST) + params["b_hh"]
    r = jax.nn.sigmoid(gi[:, 0:H] + gh[:, 0:H])
    z = jax.nn.sigmoid(gi[:, H:2 * H] + gh[:, H:2 * H])
    n = jnp.tanh(gi[:, 2 * H:3 * H] + r * gh[:, 2 * H:3 * H])
    return (1.0 - z) * n + z * h


def _reference_forward(token, hidden, params):
    h_new = _reference_step(token, hidden.reshape(1, HIDDEN_SIZE), params)
    return h_new.reshape(1, 1, HIDDEN_SIZE), h_new.reshape(1, 1, HIDDEN_SIZE)


def _reference_sequence(tokens, hidden, params):
    h = hidden.reshape(1, HIDDEN_SIZE)
    outs = []
    for i in range(tokens.shape[0]):
        h = _reference_step(tokens[i], h, params)
        outs.append(h)
    return (jnp.stack(outs).reshape(tokens.shape[0], 1, HIDDEN_SIZE),
            h.reshape(1, 1, HIDDEN_SIZE))


def _init_params(key):
    """Deterministic parameter init (shapes match nn.Embedding / nn.GRU)."""
    kE, k1, k2, k3, k4 = jax.random.split(key, 5)
    H, E, V = HIDDEN_SIZE, EMBED_SIZE, VOCAB_SIZE
    bound = 1.0 / jnp.sqrt(jnp.float32(H))
    return {
        "embedding": jax.random.normal(kE, (V, E), jnp.float32),
        "w_ih": jax.random.uniform(k1, (3 * H, E), jnp.float32, -bound, bound),
        "w_hh": jax.random.uniform(k2, (3 * H, H), jnp.float32, -bound, bound),
        "b_ih": jax.random.uniform(k3, (3 * H,), jnp.float32, -bound, bound),
        "b_hh": jax.random.uniform(k4, (3 * H,), jnp.float32, -bound, bound),
    }


if __name__ == "__main__":
    key = jax.random.PRNGKey(0)
    pkey, tkey, skey = jax.random.split(key, 3)

    params = _init_params(pkey)
    prepped = prepare_params(params)          # one-time layout / fusion / precompute prep
    hidden0 = jnp.zeros((1, 1, HIDDEN_SIZE), jnp.float32)   # initHidden()

    # --- single-step forward (exact EncoderRNN.forward semantics) ---
    token = jax.random.randint(tkey, (1,), 0, VOCAB_SIZE, jnp.int32)
    out, hid = encoder_rnn_forward(token, hidden0, prepped)
    out, hid = jax.block_until_ready(out), jax.block_until_ready(hid)
    ref_out, ref_hid = _reference_forward(token, hidden0, params)
    assert out.shape == (1, 1, HIDDEN_SIZE) and hid.shape == (1, 1, HIDDEN_SIZE)
    assert jnp.allclose(out, ref_out, atol=1e-5, rtol=1e-5)
    assert jnp.allclose(hid, ref_hid, atol=1e-5, rtol=1e-5)

    # --- whole encoder loop (seq_len tokens) fused into one kernel call ---
    seq_len = 8
    tokens = jax.random.randint(skey, (seq_len,), 0, VOCAB_SIZE, jnp.int32)
    outs, hid_seq = encoder_rnn_sequence(tokens, hidden0, prepped)
    outs, hid_seq = jax.block_until_ready(outs), jax.block_until_ready(hid_seq)
    ref_outs, ref_hid_seq = _reference_sequence(tokens, hidden0, params)
    assert outs.shape == (seq_len, 1, HIDDEN_SIZE)
    assert jnp.allclose(outs, ref_outs, atol=1e-5, rtol=1e-5)
    assert jnp.allclose(hid_seq, ref_hid_seq, atol=1e-5, rtol=1e-5)

    print("KERNEL_OK")
</pallas_src>

<mosaic_0001>
module attributes {stable_mosaic.version = 11 : i64} {
  func.func @_gru_seq_kernel(%arg0: i32, %arg1: memref<1xi32, #tpu.memory_space<smem>>, %arg2: memref<15x384xf32, #tpu.memory_space<vmem>>, %arg3: memref<1x128xf32, #tpu.memory_space<vmem>>, %arg4: memref<128x384xf32, #tpu.memory_space<vmem>>, %arg5: memref<1x128xf32, #tpu.memory_space<vmem>>, %arg6: memref<1x128xf32, #tpu.memory_space<vmem>>, %arg7: memref<1x128xf32, #tpu.memory_space<vmem>>) attributes {dimension_semantics = [#tpu.dimension_semantics<arbitrary>], iteration_bounds = array<i64: 1>, scalar_prefetch = 1 : i64, scratch_operands = 0 : i64, tpu.core_type = #tpu.core_type<tc>, window_params = [{pipeline_mode = #tpu.pipeline_mode<synchronous>, transform_indices = @transform_0, window_bounds = array<i64: 15, 384>}, {pipeline_mode = #tpu.pipeline_mode<synchronous>, transform_indices = @transform_1, window_bounds = array<i64: 1, 128>}, {pipeline_mode = #tpu.pipeline_mode<synchronous>, transform_indices = @transform_2, window_bounds = array<i64: 128, 384>}, {pipeline_mode = #tpu.pipeline_mode<synchronous>, transform_indices = @transform_3, window_bounds = array<i64: 1, 128>}, {pipeline_mode = #tpu.pipeline_mode<synchronous>, transform_indices = @transform_4, window_bounds = array<i64: 1, 128>}, {pipeline_mode = #tpu.pipeline_mode<synchronous>, transform_indices = @transform_5, window_bounds = array<i64: 1, 128>}]} {
    %c0 = arith.constant 0 : index
    %c0_0 = arith.constant 0 : index
    %0 = vector.load %arg5[%c0, %c0_0] : memref<1x128xf32, #tpu.memory_space<vmem>>, vector<1x128xf32>
    %c0_1 = arith.constant 0 : index
    %c0_2 = arith.constant 0 : index
    %1 = vector.load %arg3[%c0_1, %c0_2] : memref<1x128xf32, #tpu.memory_space<vmem>>, vector<1x128xf32>
    %c0_i32 = arith.constant 0 : i32
    %2 = arith.index_cast %c0_i32 : i32 to index
    %3 = memref.load %arg1[%2] : memref<1xi32, #tpu.memory_space<smem>>
    %c0_i32_3 = arith.constant 0 : i32
    %4 = arith.maxsi %3, %c0_i32_3 : i32
    %c14_i32 = arith.constant 14 : i32
    %5 = arith.minsi %4, %c14_i32 : i32
    %6 = arith.index_cast %5 : i32 to index
    %c0_4 = arith.constant 0 : index
    %7 = vector.load %arg2[%6, %c0_4] : memref<15x384xf32, #tpu.memory_space<vmem>>, vector<1x384xf32>
    %c0_5 = arith.constant 0 : index
    %c0_6 = arith.constant 0 : index
    %8 = vector.load %arg4[%c0_5, %c0_6] : memref<128x384xf32, #tpu.memory_space<vmem>>, vector<128x384xf32>
    %cst = arith.constant dense<0.000000e+00> : vector<1x384xf32>
    %9 = tpu.matmul %1, %8, %cst {dimension_numbers = #tpu.dot_dimension_numbers<[1], [0], [0], [1], [0, 0, 1, 1], [], []>} : vector<1x128xf32>, vector<128x384xf32>, vector<1x384xf32> -> vector<1x384xf32>
    %10 = vector.extract_strided_slice %7 {offsets = [0, 0], sizes = [1, 128], strides = [1, 1]} : vector<1x384xf32> to vector<1x128xf32>
    %11 = vector.extract_strided_slice %9 {offsets = [0, 0], sizes = [1, 128], strides = [1, 1]} : vector<1x384xf32> to vector<1x128xf32>
    %12 = arith.addf %10, %11 : vector<1x128xf32>
    %13 = arith.negf %12 : vector<1x128xf32>
    %14 = math.exp %13 : vector<1x128xf32>
    %cst_7 = arith.constant 1.000000e+00 : f32
    %15 = vector.broadcast %cst_7 : f32 to vector<1x128xf32>
    %16 = arith.addf %15, %14 : vector<1x128xf32>
    %17 = arith.divf %15, %16 : vector<1x128xf32>
    %18 = vector.extract_strided_slice %7 {offsets = [0, 128], sizes = [1, 128], strides = [1, 1]} : vector<1x384xf32> to vector<1x128xf32>
    %19 = vector.extract_strided_slice %9 {offsets = [0, 128], sizes = [1, 128], strides = [1, 1]} : vector<1x384xf32> to vector<1x128xf32>
    %20 = arith.addf %18, %19 : vector<1x128xf32>
    %21 = arith.negf %20 : vector<1x128xf32>
    %22 = math.exp %21 : vector<1x128xf32>
    %cst_8 = arith.constant 1.000000e+00 : f32
    %23 = vector.broadcast %cst_8 : f32 to vector<1x128xf32>
    %24 = arith.addf %23, %22 : vector<1x128xf32>
    %25 = arith.divf %23, %24 : vector<1x128xf32>
    %26 = vector.extract_strided_slice %7 {offsets = [0, 256], sizes = [1, 128], strides = [1, 1]} : vector<1x384xf32> to vector<1x128xf32>
    %27 = vector.extract_strided_slice %9 {offsets = [0, 256], sizes = [1, 128], strides = [1, 1]} : vector<1x384xf32> to vector<1x128xf32>
    %28 = arith.addf %27, %0 : vector<1x128xf32>
    %29 = arith.mulf %17, %28 : vector<1x128xf32>
    %30 = arith.addf %26, %29 : vector<1x128xf32>
    %31 = math.tanh %30 : vector<1x128xf32>
    %cst_9 = arith.constant 1.000000e+00 : f32
    %32 = vector.broadcast %cst_9 : f32 to vector<1x128xf32>
    %33 = arith.subf %32, %25 : vector<1x128xf32>
    %34 = arith.mulf %33, %31 : vector<1x128xf32>
    %35 = arith.mulf %25, %1 : vector<1x128xf32>
    %36 = arith.addf %34, %35 : vector<1x128xf32>
    %37 = arith.index_cast %c0_i32 : i32 to index
    %c0_10 = arith.constant 0 : index
    %38 = vector.load %arg6[%37, %c0_10] : memref<1x128xf32, #tpu.memory_space<vmem>>, vector<1x128xf32>
    tpu.vector_store %arg6[%37, %c0_10], %36 {strides = array<i32>} : memref<1x128xf32, #tpu.memory_space<vmem>>, vector<1x128xf32>,
    %c1_i32 = arith.constant 1 : i32
    %c0_11 = arith.constant 0 : index
    %c0_12 = arith.constant 0 : index
    %39 = vector.load %arg7[%c0_11, %c0_12] : memref<1x128xf32, #tpu.memory_space<vmem>>, vector<1x128xf32>
    tpu.vector_store %arg7[%c0_11, %c0_12], %36 {strides = array<i32>} : memref<1x128xf32, #tpu.memory_space<vmem>>, vector<1x128xf32>,
    return
  }
  func.func @transform_0(%arg0: i32, %arg1: memref<1xi32, #tpu.memory_space<smem>>) -> (i32, i32) {
    %c0_i32 = arith.constant 0 : i32
    %c0_i32_0 = arith.constant 0 : i32
    %c0_i32_1 = arith.constant 0 : i32
    return %c0_i32, %c0_i32_0 : i32, i32
  }
  func.func @transform_1(%arg0: i32, %arg1: memref<1xi32, #tpu.memory_space<smem>>) -> (i32, i32) {
    %c0_i32 = arith.constant 0 : i32
    %c0_i32_0 = arith.constant 0 : i32
    %c0_i32_1 = arith.constant 0 : i32
    return %c0_i32, %c0_i32_0 : i32, i32
  }
  func.func @transform_2(%arg0: i32, %arg1: memref<1xi32, #tpu.memory_space<smem>>) -> (i32, i32) {
    %c0_i32 = arith.constant 0 : i32
    %c0_i32_0 = arith.constant 0 : i32
    %c0_i32_1 = arith.constant 0 : i32
    return %c0_i32, %c0_i32_0 : i32, i32
  }
  func.func @transform_3(%arg0: i32, %arg1: memref<1xi32, #tpu.memory_space<smem>>) -> (i32, i32) {
    %c0_i32 = arith.constant 0 : i32
    %c0_i32_0 = arith.constant 0 : i32
    %c0_i32_1 = arith.constant 0 : i32
    return %c0_i32, %c0_i32_0 : i32, i32
  }
  func.func @transform_4(%arg0: i32, %arg1: memref<1xi32, #tpu.memory_space<smem>>) -> (i32, i32) {
    %c0_i32 = arith.constant 0 : i32
    %c0_i32_0 = arith.constant 0 : i32
    %c0_i32_1 = arith.constant 0 : i32
    return %c0_i32, %c0_i32_0 : i32, i32
  }
  func.func @transform_5(%arg0: i32, %arg1: memref<1xi32, #tpu.memory_space<smem>>) -> (i32, i32) {
    %c0_i32 = arith.constant 0 : i32
    %c0_i32_0 = arith.constant 0 : i32
    %c0_i32_1 = arith.constant 0 : i32
    return %c0_i32, %c0_i32_0 : i32, i32
  }
}

</mosaic_0001>

<bundles_post_ra>
// kernel: tpu_custom_call.1
= control target key start
LH: loop header
LB: loop body
LE: loop exit
PB: predicated region body
PF: predicated region fallthrough
CT: control target
= control target key end

     0   :  { %13 = vsyncpa [#allocation5], 0  ;;  %s674_s0 = inlined_call_operand.<no memory space> [shape: s32[1], index: 0, kind: input, shape index: {}]   ;;  %s675_s1 = inlined_call_operand.hbm [shape: f32[15,384], index: 1, kind: input, shape index: {}]   ;;  %s676_s2 = inlined_call_operand.vmem [shape: f32[1,128], index: 2, kind: input, shape index: {}]   ;;  %s677_s3 = inlined_call_operand.hbm [shape: f32[128,384], index: 3, kind: input, shape index: {}]   ;;  %s678_s4 = inlined_call_operand.vmem [shape: f32[1,128], index: 4, kind: input, shape index: {}]   ;;  %s679_s5 = inlined_call_operand.hbm [shape: f32[1,128], index: 5, kind: output, shape index: {0}]   ;;  %s680_s6 = inlined_call_operand.hbm [shape: f32[1,128], index: 6, kind: output, shape index: {1}]  }
   0x1   :  { %14 = vsyncpa [#allocation8], 0 }
   0x2   :  { %15 = vsyncpa [#allocation6], 0 }
   0x3   :  { %16 = vsyncpa [#allocation11], 0  ;;  %s551_s21 = smov [#allocation4]   ;;  %s455_s25 = scalar_lea.hbm %s675_s1, 768 }
   0x4   :  { %s22_s22 = sshll.u32 %s551_s21, 4  ;;  %p456_p0 = scmp.ne.s32.totalorder %s675_s1, %s455_s25  ;;  %s23_s22 = int_to_ptr.vmem [resolvable:$true] %s22_s22 }
   0x5   :  { %p459_p1 = scmp.lt.u32.totalorder %s455_s25, %s675_s1 }
   0x7   :  { %p461_p2 = pnand %p459_p1, %p456_p0 }
   0x9   :  { %464 = shalt.err (!%p461_p2)
}
   0xa   :  { %s465_s30 = scalar_lea.vmem %s23_s22, 768  ;;  %p470_p4 = scmp.lt.s32.totalorder %s23_s22, %s23_s22 }
   0xb   :  { %p466_p3 = scmp.ne.s32.totalorder %s23_s22, %s465_s30  ;;  %p471_p5 = scmp.lt.s32.totalorder %s465_s30, %s465_s30 }
   0xd   :  { %p472_p6 = por %p471_p5, %p470_p4 }
   0xf   :  { %p473_p7 = pnand %p472_p6, %p466_p3 }
  0x11   :  { %476 = shalt.err (!%p473_p7)
}
  0x12   :  { %s552_s7 = smov 384   ;;  %s553_s8 = smov 24  }
  0x13   :  { %28 = dma.hbm_to_vmem [thread:$0]  %s675_s1, 768, %s23_s22, [#allocation5], %s552_s7, %s552_s7, %s553_s8  }
  0x14   :  { %s554_s11 = smov [#allocation7]   ;;  %s477_s15 = scalar_lea.hbm %s677_s3, 6144 }
  0x15   :  { %s36_s12 = sshll.u32 %s554_s11, 4  ;;  %p478_p8 = scmp.ne.s32.totalorder %s677_s3, %s477_s15  ;;  %s37_s12 = int_to_ptr.vmem [resolvable:$true] %s36_s12 }
  0x16   :  { %p481_p9 = scmp.lt.u32.totalorder %s477_s15, %s677_s3 }
  0x18   :  { %p483_p10 = pnand %p481_p9, %p478_p8 }
  0x1a   :  { %486 = shalt.err (!%p483_p10)
}
  0x1b   :  { %s487_s20 = scalar_lea.vmem %s37_s12, 6144  ;;  %p492_p12 = scmp.lt.s32.totalorder %s37_s12, %s37_s12 }
  0x1c   :  { %p488_p11 = scmp.ne.s32.totalorder %s37_s12, %s487_s20  ;;  %p493_p13 = scmp.lt.s32.totalorder %s487_s20, %s487_s20 }
  0x1e   :  { %p494_p0 = por %p493_p13, %p492_p12 }
  0x20   :  { %p495_p1 = pnand %p494_p0, %p488_p11 }
  0x22   :  { %498 = shalt.err (!%p495_p1)
}
  0x23   :  { %42 = dma.hbm_to_vmem [thread:$0]  %s677_s3, 6144, %s37_s12, [#allocation8], %s552_s7, %s552_s7, %s553_s8  }
  0x24   :  { %543 = dma.done.wait [#allocation5], 768  }
  0x25   :  { %544 = vsyncadd [#allocation5], 4294966528 }
  0x26   :  { %545 = dma.done.wait [#allocation8], 6144  }
  0x27   :  { %546 = vsyncadd [#allocation8], 4294961152  ;;  %v555_v0 = vmov 0.0|0.0   ;;  %v556_v1 = vmov 0.0   ;;  %vm557_vm0 = vmmov 0   ;;  %v68_v2 = vld [vmem:[#allocation7 + $0x8] sm:$0xff] }
  0x28   :  { %412 = vmatprep.subr.bf16.mxu1 %v555_v0  ;;  %179 = vmatprep.mubr.f32.mxu0 %v556_v1  ;;  %v71_v3 = vld [vmem:[#allocation7 + $0x20] sm:$0xff]  ;;  %v70_v6 = vld [vmem:[#allocation7 + $0x18] sm:$0xff]  ;;  %v77_v8 = vld [vmem:[#allocation7 + $0x50] sm:$0xff]  ;;  %p54_p2 = scmp.gt.s32.totalorder %s674_s0, 0  ;;  %p318_p3 = scmp.lt.s32.totalorder %s674_s0, 14 }
  0x29   :  { %377 = vmatprep.mubr.msk.f32.mxu1 %vm557_vm0, %v556_v1  ;;  %v67_v4 = vld [vmem:[#allocation7] sm:$0xff]  ;;  %v380_v5 = vpack.c.bf16 %v71_v3, %v68_v2  ;;  %v74_v7 = vld [vmem:[#allocation7 + $0x38] sm:$0xff]  ;;  %v73_v11 = vld [vmem:[#allocation7 + $0x30] sm:$0xff]  ;;  %s558_s10 = smov [#allocation9]   ;;  %s559_s12 = smov [#allocation10]  }
  0x2a   :  { %v382_v9 = vpack.c.bf16 %v70_v6, %v67_v4  ;;  %v384_v10 = vpack.c.bf16 %v77_v8, %v74_v7  ;;  %v76_v12 = vld [vmem:[#allocation7 + $0x48] sm:$0xff]  ;;  %v83_v14 = vld [vmem:[#allocation7 + $0x80] sm:$0xff]  ;;  %v82_v18 = vld [vmem:[#allocation7 + $0x78] sm:$0xff]  ;;  %s682_s0 = smov (!%p54_p2, %s674_s0), 0  ;;  %s291_s11 = sshll.u32 %s558_s10, 4  ;;  %s292_s11 = int_to_ptr.vmem [resolvable:$true] %s291_s11 }
  0x2b   :  { %v80_v13 = vld [vmem:[#allocation7 + $0x68] sm:$0xff]  ;;  %381 = vmatprep.subr.bf16.mxu0 %v380_v5  ;;  %v386_v15 = vpack.c.bf16 %v76_v12, %v73_v11  ;;  %v79_v17 = vld [vmem:[#allocation7 + $0x60] sm:$0xff]  ;;  %v86_v19 = vld [vmem:[#allocation7 + $0x98] sm:$0xff]  ;;  %s684_s0 = smov (!%p318_p3, %s682_s0), 14  ;;  %s301_s13 = sshll.u32 %s559_s12, 4  ;;  %s642_s13 = int_to_ptr.vmem [resolvable:$true] %s301_s13 }
  0x2c   :  { %383 = vmatpush1.bf16.msra.mxu0 %v382_v9  ;;  %v388_v16 = vpack.c.bf16 %v83_v14, %v80_v13  ;;  %v89_v20 = vld [vmem:[#allocation7 + $0xb0] sm:$0xff]  ;;  %v390_v21 = vpack.c.bf16 %v82_v18, %v79_v17  ;;  %v88_v24 = vld [vmem:[#allocation7 + $0xa8] sm:$0xff]  ;;  %v95_v28 = vld [vmem:[#allocation7 + $0xe0] sm:$0xff]  ;;  %s58_s28 = sshra.s32 %s684_s0, 3  ;;  %s61_s30 = sand.u32 7, %s684_s0 }
  0x2d   :  { %385 = vmatprep.subr.bf16.mxu0 %v384_v10  ;;  %v85_v22 = vld [vmem:[#allocation7 + $0x90] sm:$0xff]  ;;  %v392_v23 = vpack.c.bf16 %v89_v20, %v86_v19  ;;  %v72_v26 = vld [vmem:[#allocation7 + $0x28] sm:$0xff]  ;;  %v75_v30 = vld [vmem:[#allocation7 + $0x40] sm:$0xff]  ;;  %s323_s29 = smul.u32 24, %s58_s28  ;;  %s503_s14 = scalar_lea.vmem %s292_s11, 32 }
  0x2e   :  { %v69_v25 = vld [vmem:[#allocation7 + $0x10] sm:$0xff]  ;;  %v92_v27 = vld [vmem:[#allocation7 + $0xc8] sm:$0xff]  ;;  %v78_v31 = vld [vmem:[#allocation7 + $0x58] sm:$0xff]  ;;  %v394_v32 = vpack.c.bf16 %v88_v24, %v85_v22  ;;  %p504_p5 = scmp.lt.s32.totalorder %s292_s11, %s292_s11 }
  0x2f   :  { %v413_v29 = vpack.c.bf16 %v72_v26, %v69_v25  ;;  %v91_v33 = vld [vmem:[#allocation7 + $0xc0] sm:$0xff]  ;;  %v416_v34 = vpack.c.bf16 %v78_v31, %v75_v30  ;;  %v396_v35 = vpack.c.bf16 %v95_v28, %v92_v27  ;;  %v94_v36 = vld [vmem:[#allocation7 + $0xd8] sm:$0xff]  ;;  %v81_v37 = vld [vmem:[#allocation7 + $0x70] sm:$0xff]  ;;  %s64_s7 = sadd.s32 %s323_s29, %s61_s30 }
  0x30   :  { %387 = vmatpush1.bf16.msra.mxu0 %v386_v15  ;;  %v84_v38 = vld [vmem:[#allocation7 + $0x88] sm:$0xff]  ;;  %v98_v39 = vld [vmem:[#allocation7 + $0xf8] sm:$0xff]  ;;  %v101_v40 = vld [vmem:[#allocation7 + $0x110] sm:$0xff]  ;;  %v398_v41 = vpack.c.bf16 %v94_v36, %v91_v33  ;;  %s65_s8 = scalar_lea.vmem [#allocation4], %s64_s7 }
  0x31   :  { %389 = vmatprep.subr.bf16.mxu0 %v388_v16  ;;  %414 = vmatpush3.bf16.msra.mxu1 %v413_v29  ;;  %v97_v42 = vld [vmem:[#allocation7 + $0xf0] sm:$0xff]  ;;  %v419_v43 = vpack.c.bf16 %v84_v38, %v81_v37  ;;  %v400_v44 = vpack.c.bf16 %v101_v40, %v98_v39  ;;  %v100_v45 = vld [vmem:[#allocation7 + $0x108] sm:$0xff]  ;;  %v87_v46 = vld [vmem:[#allocation7 + $0xa0] sm:$0xff] }
  0x32   :  { %415 = vmatprep.subr.bf16.mxu1 %v555_v0  ;;  %v90_v47 = vld [vmem:[#allocation7 + $0xb8] sm:$0xff]  ;;  %v104_v48 = vld [vmem:[#allocation7 + $0x128] sm:$0xff]  ;;  %v107_v49 = vld [vmem:[#allocation7 + $0x140] sm:$0xff]  ;;  %v402_v50 = vpack.c.bf16 %v100_v45, %v97_v42 }
  0x33   :  { %v103_v51 = vld [vmem:[#allocation7 + $0x120] sm:$0xff]  ;;  %v422_v52 = vpack.c.bf16 %v90_v47, %v87_v46  ;;  %v404_v53 = vpack.c.bf16 %v107_v49, %v104_v48  ;;  %v106_v54 = vld [vmem:[#allocation7 + $0x138] sm:$0xff]  ;;  %v93_v55 = vld [vmem:[#allocation7 + $0xd0] sm:$0xff] }
  0x34   :  { %391 = vmatpush1.bf16.msra.mxu0 %v390_v21  ;;  %v96_v56 = vld [vmem:[#allocation7 + $0xe8] sm:$0xff]  ;;  %v110_v57 = vld [vmem:[#allocation7 + $0x158] sm:$0xff]  ;;  %v113_v58 = vld [vmem:[#allocation7 + $0x170] sm:$0xff]  ;;  %v406_v59 = vpack.c.bf16 %v106_v54, %v103_v51 }
  0x35   :  { %393 = vmatprep.subr.bf16.mxu0 %v392_v23  ;;  %417 = vmatpush3.bf16.msra.mxu1 %v416_v34  ;;  %v109_v60 = vld [vmem:[#allocation7 + $0x150] sm:$0xff]  ;;  %v425_v61 = vpack.c.bf16 %v96_v56, %v93_v55  ;;  %v408_v62 = vpack.c.bf16 %v113_v58, %v110_v57  ;;  %v112_v63 = vld [vmem:[#allocation7 + $0x168] sm:$0xff]  ;;  %v99_v1 = vld [vmem:[#allocation7 + $0x100] sm:$0xff] }
  0x36   :  { %418 = vmatprep.subr.bf16.mxu1 %v555_v0  ;;  %v102_v2 = vld [vmem:[#allocation7 + $0x118] sm:$0xff]  ;;  %v410_v3 = vpack.c.bf16 %v112_v63, %v109_v60  ;;  %v105_v5 = vld [vmem:[#allocation7 + $0x130] sm:$0xff]  ;;  %v108_v6 = vld [vmem:[#allocation7 + $0x148] sm:$0xff] }
  0x37   :  { %v428_v4 = vpack.c.bf16 %v102_v2, %v99_v1  ;;  %v52_v7 = vld [vmem:[%s676_s2] sm:$0x1]  ;;  %v431_v8 = vpack.c.bf16 %v108_v6, %v105_v5  ;;  %v111_v9 = vld [vmem:[#allocation7 + $0x160] sm:$0xff]  ;;  %v114_v10 = vld [vmem:[#allocation7 + $0x178] sm:$0xff] }
  0x38   :  { %395 = vmatpush1.bf16.msra.mxu0 %v394_v32  ;;  %v434_v11 = vpack.c.bf16 %v114_v10, %v111_v9  ;;  %v51_v24 = vld [vmem:[%s678_s4] sm:$0x1]  ;;  %s499_s4 = scalar_lea.vmem %s292_s11, 16 }
  0x39   :  { %397 = vmatprep.subr.bf16.mxu0 %v396_v35  ;;  %420 = vmatpush3.bf16.msra.mxu1 %v419_v43  ;;  %p500_p4 = scmp.ne.s32.totalorder %s292_s11, %s499_s4  ;;  %p505_p6 = scmp.lt.s32.totalorder %s503_s14, %s499_s4 }
  0x3a   :  { %421 = vmatprep.subr.bf16.mxu1 %v555_v0 }
  0x3b   :  { %p506_p7 = por %p505_p6, %p504_p5 }
  0x3c   :  { %399 = vmatpush1.bf16.msra.mxu0 %v398_v41 }
  0x3d   :  { %401 = vmatprep.subr.bf16.mxu0 %v400_v44  ;;  %423 = vmatpush3.bf16.msra.mxu1 %v422_v52  ;;  %p507_p8 = pnand %p506_p7, %p500_p4 }
  0x3e   :  { %424 = vmatprep.subr.bf16.mxu1 %v555_v0 }
  0x40   :  { %403 = vmatpush1.bf16.msra.mxu0 %v402_v50 }
  0x41   :  { %405 = vmatprep.subr.bf16.mxu0 %v404_v53  ;;  %426 = vmatpush3.bf16.msra.mxu1 %v425_v61 }
  0x42   :  { %427 = vmatprep.subr.bf16.mxu1 %v555_v0 }
  0x44   :  { %407 = vmatpush1.bf16.msra.mxu0 %v406_v59 }
  0x45   :  { %409 = vmatprep.subr.bf16.mxu0 %v408_v62  ;;  %429 = vmatpush3.bf16.msra.mxu1 %v428_v4 }
  0x46   :  { %430 = vmatprep.subr.bf16.mxu1 %v555_v0 }
  0x48   :  { %411 = vmatpush1.bf16.msra.mxu0 %v410_v3 }
  0x49   :  { %432 = vmatpush3.bf16.msra.mxu1 %v431_v8 }
  0x4a   :  { %433 = vmatprep.subr.bf16.mxu1 %v555_v0  ;;  %v66_v0 = vld [vmem:[%s65_s8] ss:$8 sm:$0x7] }
  0x4b   :  { %180 = vmatmul.mubr.f32.vlgmr.msra.gmra.mrb[0].mxu0 %v52_v7  ;;  %v264_v13 = vrot.slane %v66_v0, 1  ;;  %v275_v27 = vrot.slane %v66_v0, 2 }
  0x4d   :  { %435 = vmatpush3.bf16.msra.mxu1 %v434_v11 }
  0x50   :  { %378 = vmatmul.mubr.f32.vlgmr.msra.gmra.mrb[0].mxu1 %v52_v7 }
 0x11e   :  { %v181_v12 = vpop.f32.mrb[0].mxu0 }
 0x11f   :  { %v256_v14 = vadd.f32 %v181_v12, %v66_v0  ;;  %v183_v15 = vpop.f32.mrb[1].mxu0 }
 0x120   :  { %v266_v17 = vadd.f32 %v264_v13, %v183_v15 }
 0x121   :  { %v324_v16 = vmul.f32 -1.442695, %v256_v14 }
 0x122   :  { %v325_v18 = vmul.f32 -1.442695, %v266_v17 }
 0x123   :  { %445 = vpow2.f32 %v324_v16  ;;  %v252_v19 = vpop.f32.mrb[0].mxu1 }
 0x124   :  { %v379_v20 = vpop.f32.mrb[1].mxu1  ;;  %447 = vpow2.f32 %v325_v18  ;;  %v273_v26 = vadd.f32 %v252_v19, %v51_v24 }
 0x12d   :  { %v446_v21 = vpop.eup %445 }
 0x12e   :  { %v260_v22 = vadd.f32 1.0, %v446_v21  ;;  %v448_v23 = vpop.eup %447 }
 0x12f   :  { %v270_v25 = vadd.f32 1.0, %v448_v23 }
 0x130   :  { %449 = vrcp.f32 %v260_v22 }
 0x131   :  { %451 = vrcp.f32 %v270_v25 }
 0x13a   :  { %v450_v28 = vpop.eup %449 }
 0x13b   :  { %v274_v29 = vmul.f32 %v450_v28, %v273_v26  ;;  %v452_v31 = vpop.eup %451 }
 0x13c   :  { %v279_v32 = vsub.f32 1.0, %v452_v31  ;;  %v281_v35 = vmul.f32 %v452_v31, %v52_v7 }
 0x13d   :  { %v277_v30 = vadd.f32 %v275_v27, %v274_v29 }
 0x13f   :  { %453 = vtanh.f32 %v277_v30 }
 0x149   :  { %v454_v33 = vpop.eup %453 }
 0x14a   :  { %v280_v34 = vmul.f32 %v454_v33, %v279_v32 }
 0x14c   :  { %v282_v36 = vadd.f32 %v281_v35, %v280_v34 }
 0x14e   :  { %283 = vst [vmem:[#allocation9] sm:$0x1] %v282_v36  ;;  %284 = vst [vmem:[#allocation10] sm:$0x1] %v282_v36 }
 0x14f   :  { %510 = shalt.err (!%p507_p8)
}
 0x150   :  { %s511_s17 = scalar_lea.hbm %s679_s5, 16 }
 0x151   :  { %p512_p9 = scmp.ne.s32.totalorder %s679_s5, %s511_s17  ;;  %p515_p10 = scmp.lt.u32.totalorder %s511_s17, %s679_s5 }
 0x153   :  { %p517_p11 = pnand %p515_p10, %p512_p9 }
 0x155   :  { %520 = shalt.err (!%p517_p11)
}
 0x156   :  { %294 = dma.vmem_to_hbm [thread:$0]  %s292_s11, 16, %s679_s5, [#allocation6]  }
 0x157   :  { %s521_s22 = scalar_lea.vmem %s642_s13, 16  ;;  %s525_s23 = scalar_lea.vmem %s642_s13, 32 }
 0x158   :  { %p522_p12 = scmp.ne.s32.totalorder %s642_s13, %s521_s22  ;;  %p526_p13 = scmp.lt.s32.totalorder %s642_s13, %s642_s13 }
 0x159   :  { %p527_p0 = scmp.lt.s32.totalorder %s525_s23, %s521_s22 }
 0x15b   :  { %p528_p1 = por %p527_p0, %p526_p13 }
 0x15d   :  { %p529_p2 = pnand %p528_p1, %p522_p12 }
 0x15f   :  { %532 = shalt.err (!%p529_p2)
}
 0x160   :  { %s533_s26 = scalar_lea.hbm %s680_s6, 16 }
 0x161   :  { %p534_p3 = scmp.ne.s32.totalorder %s680_s6, %s533_s26  ;;  %p537_p4 = scmp.lt.u32.totalorder %s533_s26, %s680_s6 }
 0x163   :  { %p539_p5 = pnand %p537_p4, %p534_p3 }
 0x165   :  { %542 = shalt.err (!%p539_p5)
}
 0x166   :  { %304 = dma.vmem_to_hbm [thread:$0]  %s642_s13, 16, %s680_s6, [#allocation11]  }
 0x167   :  { %547 = dma.done.wait [#allocation6], 16  }
 0x168   :  { %548 = vsyncadd [#allocation6], 4294967280 }
 0x169   :  { %549 = dma.done.wait [#allocation11], 16  }
 0x16a   :  { %550 = vsyncadd [#allocation11], 4294967280 }
 0x16b   :  { %311 = vsyncpa [#allocation5], 1 }
 0x16c   :  { %312 = vsyncpa [#allocation8], 1 }
 0x16d   :  { %313 = vsyncpa [#allocation6], 1 }
 0x16e   :  { %314 = vsyncpa [#allocation11], 1 }

</bundles_post_ra>
